<compile_context>
chip_gen: v5e
topology: v5e:2x2
jax: 0.10.0
libtpu: 0.0.40
codegen_flags: <defaults>
</compile_context>

<pallas_src>
import functools

import jax
import jax.numpy as jnp
from jax.experimental import pallas as pl
from jax.experimental.pallas import tpu as pltpu


def _round_up(x, m):
    return ((x + m - 1) // m) * m


def _center_loss_kernel(feats_ref, targets_ref, center_ref, sse_ref, *, batch):
    """One batch tile: emit a lane-dense (1, D) masked partial SSE."""
    tb = feats_ref.shape[0]
    row0 = pl.program_id(0) * tb
    row_ids = row0 + jax.lax.broadcasted_iota(jnp.int32, (tb, 1), 0)
    valid = row_ids < batch                                 # mask OOB tail rows of last block
    real = jnp.logical_and(targets_ref[...] == 0, valid)    # (tb, 1) bool

    feats = feats_ref[...].astype(jnp.float32)              # upcast in-register (native dtype DMA)
    center = center_ref[...].astype(jnp.float32)            # (1, D)
    diff = feats - center                                   # (tb, D)
    sq = diff * diff
    sq = jnp.where(real, sq, 0.0)                           # select, not multiply: 0 even if tail is NaN
    sse_ref[0] = jnp.sum(sq, axis=0, keepdims=True)         # sublane reduce -> lane-dense (1, D)


def center_loss(feats, targets, center, *, block_rows=1024):
    """feats: (B, D) float/bfloat, targets: (B,) int, center: (D,) -> scalar f32."""
    B, D = feats.shape

    # Tile the batch: multiple of 8 sublanes; aim for >= 2 blocks so both v7x
    # TensorCores get work, without exceeding block_rows.
    tb = max(8, min(int(block_rows), _round_up(pl.cdiv(B, 2), 8)))
    num_blocks = pl.cdiv(B, tb)

    targets2d = targets.astype(jnp.int32).reshape(B, 1)
    center2d = center.astype(jnp.float32).reshape(1, D)

    # VMEM budget: 2x double-buffered input tile + ~4x f32 temporaries, with
    # headroom; stays inside v7x's 64 MiB physical VMEM at the default tile.
    itemsize = jnp.dtype(feats.dtype).itemsize
    tile_in = tb * D * itemsize
    tile_f32 = tb * D * 4
    vmem_limit = int(min(max(2 * (2 * tile_in + 4 * tile_f32), 32 * 1024 * 1024),
                         100 * 1024 * 1024))

    cost = pl.CostEstimate(
        flops=3 * B * D,
        transcendentals=0,
        bytes_accessed=B * D * itemsize + B * 4 + D * 4 + num_blocks * D * 4,
    )

    sse_parts = pl.pallas_call(
        functools.partial(_center_loss_kernel, batch=B),
        out_shape=jax.ShapeDtypeStruct((num_blocks, 1, D), jnp.float32),
        grid=(num_blocks,),
        in_specs=[
            pl.BlockSpec((tb, D), lambda i: (i, 0)),   # feats tile, native dtype, full-D lanes
            pl.BlockSpec((tb, 1), lambda i: (i, 0)),   # targets tile (int32)
            pl.BlockSpec((1, D), lambda i: (0, 0)),    # center, resident every step
        ],
        out_specs=pl.BlockSpec((1, 1, D), lambda i: (i, 0, 0)),  # lane-dense per-block SSE partial
        compiler_params=pltpu.CompilerParams(
            dimension_semantics=("parallel",),          # shard blocks across TCs (v7x)
            vmem_limit_bytes=vmem_limit),
        cost_estimate=cost,
    )(feats, targets2d, center2d)

    # Finalize once in the wrapper from the emitted partials.
    sse = jnp.sum(sse_parts)
    count = jnp.sum((targets == 0).astype(jnp.float32))   # tiny; computed outside the kernel
    denom = jnp.maximum(count * jnp.float32(D), jnp.float32(1.0))
    return jnp.where(count > 0.0, sse / denom, jnp.float32(0.0))


def center_loss_ref(feats, targets, center):
    feats = feats.astype(jnp.float32)
    center = center.astype(jnp.float32)
    mask = (targets == 0).astype(jnp.float32)[:, None]
    diff = feats - center[None, :]
    sse = jnp.sum(diff * diff * mask)
    count = jnp.sum(mask)
    return jnp.where(count > 0,
                     sse / jnp.maximum(count * feats.shape[1], 1.0),
                     0.0)


if __name__ == "__main__":
    key = jax.random.PRNGKey(0)
    k1, k2, k3, k4, k5, k6, k7 = jax.random.split(key, 7)

    # Small shapes consistent with the module (same math as input_dims=768).
    B, D = 8, 32
    feats = jax.random.normal(k1, (B, D), dtype=jnp.float32)
    center = jax.random.normal(k2, (D,), dtype=jnp.float32)   # ~ nn.Parameter(randn)
    targets = jax.random.bernoulli(k3, p=0.5, shape=(B,)).astype(jnp.int32)

    loss = center_loss(feats, targets, center)
    jax.block_until_ready(loss)
    ref = center_loss_ref(feats, targets, center)
    assert jnp.allclose(loss, ref, rtol=1e-5, atol=1e-5), (loss, ref)

    # "No real feats" branch (all targets != 0 -> loss == 0.0).
    loss_empty = center_loss(feats, jnp.ones((B,), jnp.int32), center)
    jax.block_until_ready(loss_empty)
    assert jnp.allclose(loss_empty, 0.0), loss_empty

    # Multi-block grid with B NOT a multiple of the tile: exercises the
    # in-kernel tail masking (no wrapper padding, last block runs past B).
    B2 = 13
    feats2 = jax.random.normal(k4, (B2, D), dtype=jnp.float32)
    targets2 = jax.random.bernoulli(k5, p=0.5, shape=(B2,)).astype(jnp.int32)
    loss2 = center_loss(feats2, targets2, center, block_rows=8)   # grid=(2,), ragged tail
    jax.block_until_ready(loss2)
    ref2 = center_loss_ref(feats2, targets2, center)
    assert jnp.allclose(loss2, ref2, rtol=1e-5, atol=1e-5), (loss2, ref2)

    # Native-dtype pass-through (bf16 streamed as-is) with module-default D=768
    # (lane-dense output) and a 2-block grid with a masked tail.
    B3, D3 = 24, 768
    feats3 = jax.random.normal(k6, (B3, D3), dtype=jnp.bfloat16)
    center3 = jax.random.normal(k7, (D3,), dtype=jnp.float32)
    targets3 = jax.random.bernoulli(k3, p=0.5, shape=(B3,)).astype(jnp.int32)
    loss3 = center_loss(feats3, targets3, center3)
    jax.block_until_ready(loss3)
    ref3 = center_loss_ref(feats3, targets3, center3)
    assert jnp.allclose(loss3, ref3, rtol=1e-4, atol=1e-4), (loss3, ref3)

    print("KERNEL_OK")
</pallas_src>

<mosaic_0001>
module attributes {stable_mosaic.version = 11 : i64} {
  func.func @_center_loss_kernel(%arg0: i32, %arg1: memref<8x32xf32, #tpu.memory_space<vmem>>, %arg2: memref<8x1xi32, #tpu.memory_space<vmem>>, %arg3: memref<1x32xf32, #tpu.memory_space<vmem>>, %arg4: memref<1x1x32xf32, #tpu.memory_space<vmem>>) attributes {dimension_semantics = [#tpu.dimension_semantics<parallel>], iteration_bounds = array<i64: 1>, scalar_prefetch = 0 : i64, scratch_operands = 0 : i64, tpu.core_type = #tpu.core_type<tc>, window_params = [{transform_indices = @transform_0, window_bounds = array<i64: 8, 32>}, {transform_indices = @transform_1, window_bounds = array<i64: 8, 1>}, {pipeline_mode = #tpu.pipeline_mode<synchronous>, transform_indices = @transform_2, window_bounds = array<i64: 1, 32>}, {transform_indices = @transform_3, window_bounds = array<i64: 1, 1, 32>}]} {
    %c8_i32 = arith.constant 8 : i32
    %0 = arith.muli %arg0, %c8_i32 : i32
    %1 = tpu.iota {dimensions = array<i32: 0>} : vector<8x1xi32>
    %2 = vector.broadcast %0 : i32 to vector<8x1xi32>
    %3 = arith.addi %2, %1 : vector<8x1xi32>
    %c8_i32_0 = arith.constant 8 : i32
    %4 = vector.broadcast %c8_i32_0 : i32 to vector<8x1xi32>
    %5 = arith.cmpi slt, %3, %4 : vector<8x1xi32>
    %c0 = arith.constant 0 : index
    %c0_1 = arith.constant 0 : index
    %6 = vector.load %arg2[%c0, %c0_1] : memref<8x1xi32, #tpu.memory_space<vmem>>, vector<8x1xi32>
    %c0_i32 = arith.constant 0 : i32
    %7 = vector.broadcast %c0_i32 : i32 to vector<8x1xi32>
    %8 = arith.cmpi eq, %6, %7 : vector<8x1xi32>
    %9 = arith.andi %8, %5 : vector<8x1xi1>
    %c0_2 = arith.constant 0 : index
    %c0_3 = arith.constant 0 : index
    %10 = vector.load %arg1[%c0_2, %c0_3] : memref<8x32xf32, #tpu.memory_space<vmem>>, vector<8x32xf32>
    %c0_4 = arith.constant 0 : index
    %c0_5 = arith.constant 0 : index
    %11 = vector.load %arg3[%c0_4, %c0_5] : memref<1x32xf32, #tpu.memory_space<vmem>>, vector<1x32xf32>
    %12 = vector.broadcast %11 : vector<1x32xf32> to vector<8x32xf32>
    %13 = arith.subf %10, %12 : vector<8x32xf32>
    %14 = arith.mulf %13, %13 : vector<8x32xf32>
    %cst = arith.constant 0.000000e+00 : f32
    %15 = vector.shape_cast %9 : vector<8x1xi1> to vector<8x1xi1>
    %16 = vector.broadcast %15 : vector<8x1xi1> to vector<8x32xi1>
    %17 = vector.broadcast %cst : f32 to vector<8x32xf32>
    %18 = arith.select %16, %14, %17 : vector<8x32xi1>, vector<8x32xf32>
    %cst_6 = arith.constant dense<0.000000e+00> : vector<32xf32>
    %19 = vector.multi_reduction <add>, %18, %cst_6 [0] : vector<8x32xf32> to vector<32xf32>
    %20 = vector.shape_cast %19 : vector<32xf32> to vector<1x32xf32>
    %c0_7 = arith.constant 0 : index
    %c0_8 = arith.constant 0 : index
    %c0_9 = arith.constant 0 : index
    %21 = vector.load %arg4[%c0_7, %c0_8, %c0_9] : memref<1x1x32xf32, #tpu.memory_space<vmem>>, vector<1x1x32xf32>
    %22 = vector.shape_cast %21 : vector<1x1x32xf32> to vector<1x32xf32>
    %23 = vector.shape_cast %20 : vector<1x32xf32> to vector<1x1x32xf32>
    tpu.vector_store %arg4[%c0_7, %c0_8, %c0_9], %23 {strides = array<i32>} : memref<1x1x32xf32, #tpu.memory_space<vmem>>, vector<1x1x32xf32>,
    return
  }
  func.func @transform_0(%arg0: i32) -> (i32, i32) {
    %c0_i32 = arith.constant 0 : i32
    %c0_i32_0 = arith.constant 0 : i32
    return %arg0, %c0_i32 : i32, i32
  }
  func.func @transform_1(%arg0: i32) -> (i32, i32) {
    %c0_i32 = arith.constant 0 : i32
    %c0_i32_0 = arith.constant 0 : i32
    return %arg0, %c0_i32 : i32, i32
  }
  func.func @transform_2(%arg0: i32) -> (i32, i32) {
    %c0_i32 = arith.constant 0 : i32
    %c0_i32_0 = arith.constant 0 : i32
    %c0_i32_1 = arith.constant 0 : i32
    return %c0_i32, %c0_i32_0 : i32, i32
  }
  func.func @transform_3(%arg0: i32) -> (i32, i32, i32) {
    %c0_i32 = arith.constant 0 : i32
    %c0_i32_0 = arith.constant 0 : i32
    %c0_i32_1 = arith.constant 0 : i32
    return %arg0, %c0_i32, %c0_i32_0 : i32, i32, i32
  }
}

</mosaic_0001>

<bundles_post_ra>
// kernel: tpu_custom_call.1
= control target key start
LH: loop header
LB: loop body
LE: loop exit
PB: predicated region body
PF: predicated region fallthrough
CT: control target
= control target key end

     0   :  { %v93_v1 = vmov 0   ;;  %s127_s0 = inlined_call_operand.vmem [shape: f32[8,32], index: 0, kind: input, shape index: {}]   ;;  %s128_s1 = inlined_call_operand.vmem [shape: s32[8,1], index: 1, kind: input, shape index: {}]   ;;  %s129_s2 = inlined_call_operand.vmem [shape: f32[1,32], index: 2, kind: input, shape index: {}]   ;;  %s130_s3 = inlined_call_operand.hbm [shape: f32[1,1,32], index: 3, kind: output, shape index: {}]  }
   0x1   :  { %v21_v0 = vld [vmem:[%s128_s1] sm:$0xff]  ;;  %65 = vset.pattern.permute.xlu0 %v93_v1 }
   0x2   :  { %vm22_vm0 = vcmp.eq.s32.totalorder %v21_v0, 0 }
   0x3   :  { %8 = vsyncpa [#allocation3], 0  ;;  %v31_v2 = vsel %vm22_vm0, 1, %v93_v1  ;;  %v66_v3 = vld [vmem:[%s129_s2] ss:$0 sm:$0xff]  ;;  %vm37_vm1 = vcmask 261120  }
   0x4   :  { %33 = vperm.xlu0 %65, %v31_v2   ;;  %v24_v4 = vld [vmem:[%s127_s0] sm:$0xff]  ;;  %s94_s1 = smov [#allocation2]   ;;  %s54_s2 = sshll.u32 %s130_s3, 4  ;;  %vm45_vm3 = vcmask 253952   ;;  %s55_s2 = int_to_ptr.hbm [resolvable:$true] %s54_s2 }
   0x5   :  { %v29_v5 = vsub.f32 %v24_v4, %v66_v3  ;;  %s52_s18 = sshll.u32 %s94_s1, 4  ;;  %s53_s18 = int_to_ptr.vmem [resolvable:$true] %s52_s18 }
   0x7   :  { %v30_v6 = vmul.f32 %v29_v5, %v29_v5 }
  0x76   :  { %v34_v7 = vpop.permute.xlu0 %33 }
  0x77   :  { %vm35_vm2 = vcmp.eq.s32.totalorder %v34_v7, 1 }
  0x78   :  { %v36_v8 = vsel %vm35_vm2, %v30_v6, 0.0 }
  0x79   :  { %v38_v9 = vsel %vm37_vm1, %v36_v8, 0.0 }
  0x7a   :  { %v39_v10 = vrot.slane %v38_v9, 4 }
  0x7c   :  { %v40_v11 = vadd.f32 %v39_v10, %v38_v9 }
  0x7e   :  { %v41_v12 = vrot.slane %v40_v11, 2 }
  0x80   :  { %v42_v13 = vadd.f32 %v41_v12, %v40_v11 }
  0x82   :  { %v43_v14 = vrot.slane %v42_v13, 1 }
  0x84   :  { %v44_v15 = vadd.f32 %v43_v14, %v42_v13 }
  0x86   :  { %46 = vst.msk [vmem:[#allocation2] sm:$0x1] %vm45_vm3, %v44_v15 }
  0x87   :  { %57 = dma.vmem_to_hbm [thread:$0]  %s53_s18, 16, %s55_s2, [#allocation3]  }
  0x88   :  { %91 = dma.done.wait [#allocation3], 16  }
  0x89   :  { %92 = vsyncadd [#allocation3], 4294967280 }
  0x8a   :  { %62 = vsyncpa [#allocation3], 1 }

</bundles_post_ra>
